<compile_context>
chip_gen: v7x
topology: tpu7x:2x2x1
jax: 0.10.0
libtpu: 0.0.40
codegen_flags: <defaults>
</compile_context>

<pallas_src>
import jax
import jax.numpy as jnp
from jax.experimental import pallas as pl
from jax.experimental.pallas import tpu as pltpu

IN_DIM = 128
HIDDEN = 256
MID = 64
OUT = 1


def _mlp_kernel(x_ref, w1_ref, b1_ref, w2_ref, b2_ref, w3_ref, b3_ref, o_ref):
    # Layer 1: (TM,128)bf16 @ (128,256)bf16 -> f32, +bias, ReLU   (MXU)
    h1 = jnp.dot(x_ref[...], w1_ref[...], preferred_element_type=jnp.float32)
    h1 = jnp.maximum(h1 + b1_ref[...], 0.0)
    # Layer 2: (TM,256)bf16 @ (256,64)bf16 -> f32, +bias, ReLU    (MXU)
    h2 = jnp.dot(h1.astype(jnp.bfloat16), w2_ref[...],
                 preferred_element_type=jnp.float32)
    h2 = jnp.maximum(h2 + b2_ref[...], 0.0)
    # Layer 3: 64 -> 1 projection on the VPU + lane reduction (XLU) instead of
    # a 1-wide MXU matmul (w3 is stored as a (1, 64) row).
    z = jnp.sum(h2 * w3_ref[...], axis=-1, keepdims=True) + b3_ref[...]
    o_ref[...] = jax.nn.sigmoid(z).astype(o_ref.dtype)
    # TODO(synk): Dropout(p=0.1) omitted (inference semantics); training-mode
    # dropout would need pltpu.prng_seed / prng_random_bits masking.


def _round_up(x, m):
    return ((x + m - 1) // m) * m


def _pick_tm(n, max_tm):
    """Row tile: target ~2 grid steps (per-step overhead dominates this tiny
    MLP; 2 parallel steps still feed both v7x TensorCores), cap for VMEM."""
    tm = _round_up(pl.cdiv(n, 2), 8)
    return max(8, min(max_tm, tm))


def _xla_forward(x, params):
    """Plain-XLA fallback for tiny batches (kernel launch overhead dominates)."""
    w1, b1, w2, b2, w3, b3 = params
    xf = x.astype(jnp.bfloat16).astype(jnp.float32)
    h1 = jnp.maximum(xf @ w1.astype(jnp.float32) + b1, 0.0)
    h1b = h1.astype(jnp.bfloat16).astype(jnp.float32)
    h2 = jnp.maximum(h1b @ w2.astype(jnp.float32) + b2, 0.0)
    return jax.nn.sigmoid(jnp.sum(h2 * w3, axis=-1, keepdims=True) + b3)


def stroke_type_decoder(x, params, *, max_tm=1024, min_rows_for_pallas=64):
    """x: (N, 128) float32.  Returns (N, 1) float32 = sigmoid(MLP(x))."""
    w1, b1, w2, b2, w3, b3 = params
    n = x.shape[0]
    if n < min_rows_for_pallas:
        return _xla_forward(x, params)

    tm = _pick_tm(n, max_tm)
    n_pad = _round_up(n, tm)
    x = x.astype(jnp.bfloat16)
    if n_pad != n:
        x = jnp.pad(x, ((0, n_pad - n), (0, 0)))  # padded rows sliced off below
    grid = (n_pad // tm,)

    weight_bytes = (IN_DIM * HIDDEN * 2 + HIDDEN * MID * 2
                    + (HIDDEN + MID + MID + OUT) * 4)
    cost = pl.CostEstimate(
        flops=2 * n_pad * (IN_DIM * HIDDEN + HIDDEN * MID + MID),
        transcendentals=n_pad,                       # sigmoid ~= 1 exp per row
        bytes_accessed=n_pad * IN_DIM * 2 + weight_bytes + n_pad * OUT * 4,
    )

    full = lambda shape: pl.BlockSpec(shape, lambda i: (0, 0))
    out = pl.pallas_call(
        _mlp_kernel,
        out_shape=jax.ShapeDtypeStruct((n_pad, OUT), jnp.float32),
        grid_spec=pltpu.PrefetchScalarGridSpec(
            num_scalar_prefetch=0,
            grid=grid,
            in_specs=[
                pl.BlockSpec((tm, IN_DIM), lambda i: (i, 0)),  # x rows (bf16)
                full((IN_DIM, HIDDEN)),                         # W1 (bf16)
                full((1, HIDDEN)),                              # b1 (f32)
                full((HIDDEN, MID)),                            # W2 (bf16)
                full((1, MID)),                                 # b2 (f32)
                full((1, MID)),                                 # W3 row (f32)
                full((1, OUT)),                                 # b3 (f32)
            ],
            out_specs=pl.BlockSpec((tm, OUT), lambda i: (i, 0)),
        ),
        compiler_params=pltpu.CompilerParams(
            dimension_semantics=("parallel",),
            vmem_limit_bytes=32 * 1024 * 1024,
        ),
        cost_estimate=cost,
    )(x, w1, b1, w2, b2, w3, b3)
    return out[:n]


def init_params(key):
    """Deterministic synthetic parameters matching nn.Linear shapes.

    Weights stored (in, out) == transposed PyTorch layout.  W1/W2 kept in
    bfloat16 (MXU-native); biases and the (1, 64) final-projection row in f32.
    """
    ks = jax.random.split(key, 6)
    w1 = (jax.random.normal(ks[0], (IN_DIM, HIDDEN), jnp.float32) * 0.05
          ).astype(jnp.bfloat16)
    b1 = jax.random.normal(ks[1], (1, HIDDEN), jnp.float32) * 0.01
    w2 = (jax.random.normal(ks[2], (HIDDEN, MID), jnp.float32) * 0.05
          ).astype(jnp.bfloat16)
    b2 = jax.random.normal(ks[3], (1, MID), jnp.float32) * 0.01
    w3 = jax.random.normal(ks[4], (1, MID), jnp.float32) * 0.05   # row layout
    b3 = jax.random.normal(ks[5], (1, OUT), jnp.float32) * 0.01
    return (w1, b1, w2, b2, w3, b3)


def reference(x, params):
    """Pure-JAX reference with the same bf16-input / f32-accumulate semantics."""
    w1, b1, w2, b2, w3, b3 = params
    xf = x.astype(jnp.bfloat16).astype(jnp.float32)
    h1 = jnp.maximum(xf @ w1.astype(jnp.float32) + b1, 0.0)
    h1b = h1.astype(jnp.bfloat16).astype(jnp.float32)
    h2 = jnp.maximum(h1b @ w2.astype(jnp.float32) + b2, 0.0)
    return jax.nn.sigmoid(jnp.sum(h2 * w3, axis=-1, keepdims=True) + b3)


if __name__ == "__main__":
    key = jax.random.PRNGKey(0)
    kx, kp = jax.random.split(key)

    # Batch of stroke-node embeddings; deliberately not a tile multiple so the
    # wrapper's pad + slice path is exercised.  Tile picker -> tm=152, grid=2.
    n_strokes = 300
    x_stroke = jax.random.normal(kx, (n_strokes, IN_DIM), jnp.float32)
    x_dict = {"stroke": x_stroke}

    params = init_params(kp)

    out = stroke_type_decoder(x_dict["stroke"], params)
    out = jax.block_until_ready(out)

    ref = reference(x_dict["stroke"], params)
    assert out.shape == (n_strokes, OUT)
    assert bool(jnp.all(jnp.isfinite(out)))
    assert jnp.allclose(out, ref, atol=2e-3, rtol=0.0), "mismatch vs reference"

    print("KERNEL_OK")
</pallas_src>

<mosaic_0001>
module attributes {stable_mosaic.version = 11 : i64} {
  func.func @_mlp_kernel(%arg0: i32, %arg1: memref<152x128xbf16, #tpu.memory_space<vmem>>, %arg2: memref<128x256xbf16, #tpu.memory_space<vmem>>, %arg3: memref<1x256xf32, #tpu.memory_space<vmem>>, %arg4: memref<256x64xbf16, #tpu.memory_space<vmem>>, %arg5: memref<1x64xf32, #tpu.memory_space<vmem>>, %arg6: memref<1x64xf32, #tpu.memory_space<vmem>>, %arg7: memref<1x1xf32, #tpu.memory_space<vmem>>, %arg8: memref<152x1xf32, #tpu.memory_space<vmem>>) attributes {dimension_semantics = [#tpu.dimension_semantics<parallel>], iteration_bounds = array<i64: 2>, scalar_prefetch = 0 : i64, scratch_operands = 0 : i64, tpu.core_type = #tpu.core_type<tc>, window_params = [{transform_indices = @transform_0, window_bounds = array<i64: 152, 128>}, {pipeline_mode = #tpu.pipeline_mode<synchronous>, transform_indices = @transform_1, window_bounds = array<i64: 128, 256>}, {pipeline_mode = #tpu.pipeline_mode<synchronous>, transform_indices = @transform_2, window_bounds = array<i64: 1, 256>}, {pipeline_mode = #tpu.pipeline_mode<synchronous>, transform_indices = @transform_3, window_bounds = array<i64: 256, 64>}, {pipeline_mode = #tpu.pipeline_mode<synchronous>, transform_indices = @transform_4, window_bounds = array<i64: 1, 64>}, {pipeline_mode = #tpu.pipeline_mode<synchronous>, transform_indices = @transform_5, window_bounds = array<i64: 1, 64>}, {pipeline_mode = #tpu.pipeline_mode<synchronous>, transform_indices = @transform_6, window_bounds = array<i64: 1, 1>}, {transform_indices = @transform_7, window_bounds = array<i64: 152, 1>}]} {
    %c0 = arith.constant 0 : index
    %c0_0 = arith.constant 0 : index
    %0 = vector.load %arg1[%c0, %c0_0] : memref<152x128xbf16, #tpu.memory_space<vmem>>, vector<152x128xbf16>
    %c0_1 = arith.constant 0 : index
    %c0_2 = arith.constant 0 : index
    %1 = vector.load %arg2[%c0_1, %c0_2] : memref<128x256xbf16, #tpu.memory_space<vmem>>, vector<128x256xbf16>
    %cst = arith.constant dense<0.000000e+00> : vector<152x256xf32>
    %2 = tpu.matmul %0, %1, %cst {dimension_numbers = #tpu.dot_dimension_numbers<[1], [0], [0], [1], [0, 0, 1, 1], [], []>} : vector<152x128xbf16>, vector<128x256xbf16>, vector<152x256xf32> -> vector<152x256xf32>
    %c0_3 = arith.constant 0 : index
    %c0_4 = arith.constant 0 : index
    %3 = vector.load %arg3[%c0_3, %c0_4] : memref<1x256xf32, #tpu.memory_space<vmem>>, vector<1x256xf32>
    %4 = vector.broadcast %3 : vector<1x256xf32> to vector<152x256xf32>
    %5 = arith.addf %2, %4 : vector<152x256xf32>
    %cst_5 = arith.constant 0.000000e+00 : f32
    %6 = vector.broadcast %cst_5 : f32 to vector<152x256xf32>
    %7 = arith.maximumf %5, %6 : vector<152x256xf32>
    %8 = arith.truncf %7 : vector<152x256xf32> to vector<152x256xbf16>
    %c0_6 = arith.constant 0 : index
    %c0_7 = arith.constant 0 : index
    %9 = vector.load %arg4[%c0_6, %c0_7] : memref<256x64xbf16, #tpu.memory_space<vmem>>, vector<256x64xbf16>
    %cst_8 = arith.constant dense<0.000000e+00> : vector<152x64xf32>
    %10 = tpu.matmul %8, %9, %cst_8 {dimension_numbers = #tpu.dot_dimension_numbers<[1], [0], [0], [1], [0, 0, 1, 1], [], []>} : vector<152x256xbf16>, vector<256x64xbf16>, vector<152x64xf32> -> vector<152x64xf32>
    %c0_9 = arith.constant 0 : index
    %c0_10 = arith.constant 0 : index
    %11 = vector.load %arg5[%c0_9, %c0_10] : memref<1x64xf32, #tpu.memory_space<vmem>>, vector<1x64xf32>
    %12 = vector.broadcast %11 : vector<1x64xf32> to vector<152x64xf32>
    %13 = arith.addf %10, %12 : vector<152x64xf32>
    %cst_11 = arith.constant 0.000000e+00 : f32
    %14 = vector.broadcast %cst_11 : f32 to vector<152x64xf32>
    %15 = arith.maximumf %13, %14 : vector<152x64xf32>
    %c0_12 = arith.constant 0 : index
    %c0_13 = arith.constant 0 : index
    %16 = vector.load %arg6[%c0_12, %c0_13] : memref<1x64xf32, #tpu.memory_space<vmem>>, vector<1x64xf32>
    %17 = vector.broadcast %16 : vector<1x64xf32> to vector<152x64xf32>
    %18 = arith.mulf %15, %17 : vector<152x64xf32>
    %cst_14 = arith.constant dense<0.000000e+00> : vector<152xf32>
    %19 = vector.multi_reduction <add>, %18, %cst_14 [1] : vector<152x64xf32> to vector<152xf32>
    %20 = vector.shape_cast %19 : vector<152xf32> to vector<152x1xf32>
    %c0_15 = arith.constant 0 : index
    %c0_16 = arith.constant 0 : index
    %21 = vector.load %arg7[%c0_15, %c0_16] : memref<1x1xf32, #tpu.memory_space<vmem>>, vector<1x1xf32>
    %22 = vector.broadcast %21 : vector<1x1xf32> to vector<152x1xf32>
    %23 = arith.addf %20, %22 : vector<152x1xf32>
    %24 = arith.negf %23 : vector<152x1xf32>
    %25 = math.exp %24 : vector<152x1xf32>
    %cst_17 = arith.constant 1.000000e+00 : f32
    %26 = vector.broadcast %cst_17 : f32 to vector<152x1xf32>
    %27 = arith.addf %26, %25 : vector<152x1xf32>
    %28 = arith.divf %26, %27 : vector<152x1xf32>
    %c0_18 = arith.constant 0 : index
    %c0_19 = arith.constant 0 : index
    %29 = vector.load %arg8[%c0_18, %c0_19] : memref<152x1xf32, #tpu.memory_space<vmem>>, vector<152x1xf32>
    tpu.vector_store %arg8[%c0_18, %c0_19], %28 {strides = array<i32>} : memref<152x1xf32, #tpu.memory_space<vmem>>, vector<152x1xf32>,
    return
  }
  func.func @transform_0(%arg0: i32) -> (i32, i32) {
    %c0_i32 = arith.constant 0 : i32
    %c0_i32_0 = arith.constant 0 : i32
    return %arg0, %c0_i32 : i32, i32
  }
  func.func @transform_1(%arg0: i32) -> (i32, i32) {
    %c0_i32 = arith.constant 0 : i32
    %c0_i32_0 = arith.constant 0 : i32
    %c0_i32_1 = arith.constant 0 : i32
    return %c0_i32, %c0_i32_0 : i32, i32
  }
  func.func @transform_2(%arg0: i32) -> (i32, i32) {
    %c0_i32 = arith.constant 0 : i32
    %c0_i32_0 = arith.constant 0 : i32
    %c0_i32_1 = arith.constant 0 : i32
    return %c0_i32, %c0_i32_0 : i32, i32
  }
  func.func @transform_3(%arg0: i32) -> (i32, i32) {
    %c0_i32 = arith.constant 0 : i32
    %c0_i32_0 = arith.constant 0 : i32
    %c0_i32_1 = arith.constant 0 : i32
    return %c0_i32, %c0_i32_0 : i32, i32
  }
  func.func @transform_4(%arg0: i32) -> (i32, i32) {
    %c0_i32 = arith.constant 0 : i32
    %c0_i32_0 = arith.constant 0 : i32
    %c0_i32_1 = arith.constant 0 : i32
    return %c0_i32, %c0_i32_0 : i32, i32
  }
  func.func @transform_5(%arg0: i32) -> (i32, i32) {
    %c0_i32 = arith.constant 0 : i32
    %c0_i32_0 = arith.constant 0 : i32
    %c0_i32_1 = arith.constant 0 : i32
    return %c0_i32, %c0_i32_0 : i32, i32
  }
  func.func @transform_6(%arg0: i32) -> (i32, i32) {
    %c0_i32 = arith.constant 0 : i32
    %c0_i32_0 = arith.constant 0 : i32
    %c0_i32_1 = arith.constant 0 : i32
    return %c0_i32, %c0_i32_0 : i32, i32
  }
  func.func @transform_7(%arg0: i32) -> (i32, i32) {
    %c0_i32 = arith.constant 0 : i32
    %c0_i32_0 = arith.constant 0 : i32
    return %arg0, %c0_i32 : i32, i32
  }
}

</mosaic_0001>

<bundles_post_ra>
// kernel: tpu_custom_call.1
= control target key start
LH: loop header
LB: loop body
LE: loop exit
PB: predicated region body
PF: predicated region fallthrough
CT: control target
= control target key end

     0   :  { %s1944_s0 = inlined_call_operand.vmem [shape: bf16[304,128], index: 0, kind: input, shape index: {}]   ;;  %s1945_s1 = inlined_call_operand.hbm [shape: bf16[128,256], index: 1, kind: input, shape index: {}]   ;;  %s1946_s2 = inlined_call_operand.vmem [shape: f32[1,256], index: 2, kind: input, shape index: {}]   ;;  %s1947_s3 = inlined_call_operand.vmem [shape: bf16[256,64], index: 3, kind: input, shape index: {}]   ;;  %s1948_s4 = inlined_call_operand.vmem [shape: f32[1,64], index: 4, kind: input, shape index: {}]   ;;  %s1949_s5 = inlined_call_operand.vmem [shape: f32[1,64], index: 5, kind: input, shape index: {}]   ;;  %s1950_s6 = inlined_call_operand.<no memory space> [shape: f32[1,1], index: 6, kind: input, shape index: {}]   ;;  %s1951_s7 = inlined_call_operand.vmem [shape: f32[304,1], index: 7, kind: output, shape index: {}]  }
   0x1   :  { %v12_v0 = vstv %s1950_s6 }
   0x2   :  { %13 = vst [vmem:[#allocation2] sm:$0x1] %v12_v0 }
   0x3   :  { %14 = vsyncpa [#allocation4], 0  ;;  %s1638_s26 = smov 0  }
   0x4 LB: > { %s1252_s27 = sadd.s32 4294967295, %s1589_s26   ;;  %p1254_p0 = scmp.ge.s32.totalorder %s1589_s26, 1  ;;  %s1589_s26 = sphi %s1638_s26, %s20_s26  }
   0x5   : > { %p203_p1 = scmp.lt.s32.totalorder %s1589_s26, 3  ;;  %s1591_s28 = smov [#allocation3]  }
   0x6   : > { %s215_s29 = sshll.u32 %s1591_s28, 4  ;;  %p1652_p3 = scmp.eq.s32.totalorder %s1252_s27, 0  ;;  %s216_s29 = int_to_ptr.vmem [resolvable:$true] %s215_s29 }
   0x7   : > { %p1646_p2 = pnand %p1254_p0, %p203_p1  ;;  %s1551_s11 = scalar_lea.hbm %s1945_s1, 2048 }
   0x8   : > { %s1956_s30 = scalar_select %p1652_p3, 1, 0 }
   0x9   : > { %s1955_s6 = scalar_select %p1646_p2, 1, 0 }
   0xa   : > { %p1407_p4 = pneg %p1646_p2  ;;  %p1552_p6 = scmp.ne.s32.totalorder %s1945_s1, %s1551_s11 }
   0xb   : > { %p1558_p10 = scmp.lt.u32.totalorder %s1551_s11, %s1945_s1 }
   0xc   : > { %p1660_p5 = pnand %p1652_p3, %p1407_p4 }
   0xe   : > { %p1553_p7 = pneg %p1660_p5 }
  0x10   : > { %p1554_p8 = pnand %p1553_p7, %p1552_p6 }
  0x12   : > { %p1555_p9 = pneg %p1554_p8 }
  0x14   : > { %p1560_p11 = pnand %p1558_p10, %p1555_p9 }
  0x16   : > { %1563 = shalt.err (!%p1560_p11)
}
  0x17   : > { %s1564_s16 = scalar_lea.vmem %s216_s29, 2048  ;;  %p1572_p1 = scmp.lt.s32.totalorder %s216_s29, %s216_s29 }
  0x18   : > { %p1565_p12 = scmp.ne.s32.totalorder %s216_s29, %s1564_s16  ;;  %p1573_p4 = scmp.lt.s32.totalorder %s1564_s16, %s1564_s16 }
  0x1a   : > { %p1567_p13 = pnand %p1565_p12, %p1553_p7  ;;  %p1574_p3 = por %p1573_p4, %p1572_p1 }
  0x1c   : > { %p1568_p0 = pneg %p1567_p13 }
  0x1e   : > { %p1575_p2 = pnand %p1574_p3, %p1568_p0 }
  0x20   : > { %1578 = shalt.err (!%p1575_p2)
}
  0x21   : > { %s1592_s17 = smov 128   ;;  %s1593_s18 = smov 8  }
  0x22   : > { %1410 = dma.hbm_to_vmem [thread:$0]  (!%p1660_p5), %s1945_s1, 2048, %s216_s29, [#allocation4], %s1592_s17, %s1592_s17, %s1593_s18  }
  0x23   : > { %p1958_p6 = scmp.ne.s32.totalorder %s1955_s6, 0 }
  0x24   : > { %p1959_p8 = scmp.ne.s32.totalorder (!%p1958_p6), %s1956_s30, 0 }
  0x25   : > { %255 = sbr.rel (%p1958_p6) target bundleno = 765 (0x2fd), region = 48 }
  0x2c   : > { %1584 = dma.done.wait (%p1959_p8), [#allocation4], 2048  }
  0x2d   : > { %1586 = vsyncadd (%p1959_p8), [#allocation4], 4294965248  ;;  %v1594_v1 = vmov 0   ;;  %s287_s21 = smul.u32 19, %s1252_s27  ;;  %v1425_v2 = vld [vmem:[#allocation3 + $0x4] ss:$8 sps:$4 sm:$0xff]   ;;  %v337_v44 = vlaneseq }
  0x2e   : > { %517 = vmatprep.mubr.bf16.mxu0 %v1594_v1  ;;  %v1427_v3 = vld [vmem:[#allocation3] ss:$8 sps:$4 sm:$0xff]   ;;  %485 = vmatprep.subr.bf16.mxu0 %v1425_v2  ;;  %v1428_v4 = vld [vmem:[#allocation3 + $0x14] ss:$8 sps:$4 sm:$0xff]   ;;  %v1430_v5 = vld [vmem:[#allocation3 + $0x10] ss:$8 sps:$4 sm:$0xff]  }
  0x2f   : > { %p288_p2 = scmp.lt.s32.totalorder %s287_s21, 37  ;;  %486 = vmatpush1.bf16.msra.mxu0 %v1427_v3  ;;  %v1431_v6 = vld [vmem:[#allocation3 + $0x24] ss:$8 sps:$4 sm:$0xff]   ;;  %v1433_v7 = vld [vmem:[#allocation3 + $0x20] ss:$8 sps:$4 sm:$0xff]   ;;  %v1465_v24 = vld [vmem:[%s1947_s3 + $0x58] sm:$0xff]  }
  0x30   : > { %487 = vmatprep.subr.bf16.mxu0 %v1428_v4  ;;  %v1434_v8 = vld [vmem:[#allocation3 + $0x34] ss:$8 sps:$4 sm:$0xff]   ;;  %v1436_v9 = vld [vmem:[#allocation3 + $0x30] ss:$8 sps:$4 sm:$0xff]   ;;  %v1437_v10 = vld [vmem:[#allocation3 + $0x44] ss:$8 sps:$4 sm:$0xff]  }
  0x31   : > { %s1961_s21 = smov (!%p288_p2, %s287_s21), 37  ;;  %v1439_v11 = vld [vmem:[#allocation3 + $0x40] ss:$8 sps:$4 sm:$0xff]   ;;  %v1440_v12 = vld [vmem:[#allocation3 + $0x54] ss:$8 sps:$4 sm:$0xff]   ;;  %v338_v45 = vshrl.u32 %v337_v44, 7 }
  0x32   : > { %s1259_s22 = sshll.u32 %s1961_s21, 2  ;;  %v1442_v13 = vld [vmem:[#allocation3 + $0x50] ss:$8 sps:$4 sm:$0xff]   ;;  %v1443_v14 = vld [vmem:[#allocation3 + $0x64] ss:$8 sps:$4 sm:$0xff]   ;;  %vm966_vm0 = vcmask 523264  }
  0x33   : > { %488 = vmatpush1.bf16.msra.mxu0 %v1430_v5  ;;  %s1695_s25 = scalar_lea.vmem %s1944_s0, %s1259_s22  ;;  %v1445_v15 = vld [vmem:[#allocation3 + $0x60] ss:$8 sps:$4 sm:$0xff]   ;;  %v1446_v17 = vld [vmem:[#allocation3 + $0x74] ss:$8 sps:$4 sm:$0xff]   ;;  %v1448_v22 = vld [vmem:[#allocation3 + $0x70] ss:$8 sps:$4 sm:$0xff]  }
  0x34   : > { %489 = vmatprep.subr.bf16.mxu0 %v1431_v6  ;;  %v1459_v16 = vld [vmem:[%s1947_s3 + $0x40] sm:$0xff]   ;;  %v1461_v19 = vld [vmem:[%s1947_s3 + $0x48] sm:$0xff]   ;;  %v1463_v21 = vld [vmem:[%s1947_s3 + $0x50] sm:$0xff]   ;;  %v339_v46 = vsub.s32 0, %v338_v45  ;;  %v343_v48 = vsub.s32 1, %v338_v45  ;;  %s1260_s19 = sshll.u32 %s1961_s21, 3 }
  0x35   : > { %v1460_v18 = vld [vmem:[%s1947_s3] sm:$0xff]   ;;  %1327 = vmatprep.subr.bf16.mxu1 %v1459_v16  ;;  %v1462_v20 = vld [vmem:[%s1947_s3 + $0x8] sm:$0xff]   ;;  %v1464_v23 = vld [vmem:[%s1947_s3 + $0x10] sm:$0xff]   ;;  %s1889_s23 = scalar_lea.vmem %s1951_s7, %s1260_s19  ;;  %vm1164_vm1 = vcmask 7168  }
  0x36   : > { %1328 = vmatpush3.bf16.msra.mxu1 %v1460_v18  ;;  %v1449_v25 = vld [vmem:[%s1695_s25] sm:$0xff]   ;;  %v1466_v26 = vld [vmem:[%s1947_s3 + $0x18] sm:$0xff]   ;;  %v1469_v29 = vld [vmem:[%s1947_s3 + $0x68] sm:$0xff]  }
  0x37   : > { %490 = vmatpush1.bf16.msra.mxu0 %v1433_v7  ;;  %1329 = vmatprep.subr.bf16.mxu1 %v1461_v19  ;;  %v1467_v27 = vld [vmem:[%s1947_s3 + $0x60] sm:$0xff]   ;;  %v1450_v30 = vld [vmem:[%s1695_s25 + $0x8] sm:$0xff]   ;;  %v1451_v31 = vld [vmem:[%s1695_s25 + $0x10] sm:$0xff]  }
  0x38   : > { %491 = vmatprep.subr.bf16.mxu0 %v1434_v8  ;;  %v1468_v28 = vld [vmem:[%s1947_s3 + $0x20] sm:$0xff]   ;;  %v1452_v32 = vld [vmem:[%s1695_s25 + $0x18] sm:$0xff]   ;;  %v1454_v34 = vld [vmem:[%s1695_s25 + $0x28] sm:$0xff]  }
  0x39   : > { %v1453_v33 = vld [vmem:[%s1695_s25 + $0x20] sm:$0xff]   ;;  %v1455_v35 = vld [vmem:[%s1695_s25 + $0x30] sm:$0xff]   ;;  %v1456_v36 = vld [vmem:[%s1695_s25 + $0x38] sm:$0xff]  }
  0x3a   : > { %1330 = vmatpush3.bf16.msra.mxu1 %v1462_v20  ;;  %v1457_v37 = vld [vmem:[%s1695_s25 + $0x40] sm:$0xff]   ;;  %v1458_v38 = vld [vmem:[%s1695_s25 + $0x48] ss:$0 sps:$4 sm:$0xff]   ;;  %v1471_v40 = vld [vmem:[%s1947_s3 + $0x70] sm:$0xff]  }
  0x3b   : > { %492 = vmatpush1.bf16.msra.mxu0 %v1436_v9  ;;  %1331 = vmatprep.subr.bf16.mxu1 %v1463_v21  ;;  %v1470_v39 = vld [vmem:[%s1947_s3 + $0x28] sm:$0xff]   ;;  %v1472_v41 = vld [vmem:[%s1947_s3 + $0x30] sm:$0xff]   ;;  %v1473_v42 = vld [vmem:[%s1947_s3 + $0x78] sm:$0xff]  }
  0x3c   : > { %493 = vmatprep.subr.bf16.mxu0 %v1437_v10  ;;  %v1474_v43 = vld [vmem:[%s1947_s3 + $0x38] sm:$0xff]   ;;  %v335_v47 = vld [vmem:[%s1946_s2] sm:$0x3] }
  0x3d   : > { %v1767_v49 = vrot.slane %v335_v47, %v339_v46  ;;  %v1769_v50 = vrot.slane %v335_v47, %v343_v48 }
  0x3e   : > { %1332 = vmatpush3.bf16.msra.mxu1 %v1464_v23 }
  0x3f   : > { %494 = vmatpush1.bf16.msra.mxu0 %v1439_v11  ;;  %1333 = vmatprep.subr.bf16.mxu1 %v1465_v24 }
  0x40   : > { %495 = vmatprep.subr.bf16.mxu0 %v1440_v12 }
  0x42   : > { %1334 = vmatpush3.bf16.msra.mxu1 %v1466_v26 }
  0x43   : > { %496 = vmatpush1.bf16.msra.mxu0 %v1442_v13  ;;  %1335 = vmatprep.subr.bf16.mxu1 %v1467_v27 }
  0x44   : > { %497 = vmatprep.subr.bf16.mxu0 %v1443_v14 }
  0x46   : > { %1336 = vmatpush3.bf16.msra.mxu1 %v1468_v28 }
  0x47   : > { %498 = vmatpush1.bf16.msra.mxu0 %v1445_v15  ;;  %1337 = vmatprep.subr.bf16.mxu1 %v1469_v29 }
  0x48   : > { %499 = vmatprep.subr.bf16.mxu0 %v1446_v17 }
  0x4a   : > { %1338 = vmatpush3.bf16.msra.mxu1 %v1470_v39 }
  0x4b   : > { %500 = vmatpush1.bf16.msra.mxu0 %v1448_v22  ;;  %1339 = vmatprep.subr.bf16.mxu1 %v1471_v40 }
  0x4e   : > { %518 = vmatmul.mubr.bf16.vlgmr.msra.gmra.mrb[0].mxu0 %v1449_v25  ;;  %1340 = vmatpush3.bf16.msra.mxu1 %v1472_v41 }
  0x4f   : > { %527 = vmatprep.mubr.bf16.mxu0 %v1594_v1  ;;  %1341 = vmatprep.subr.bf16.mxu1 %v1473_v42 }
  0x52   : > { %1342 = vmatpush3.bf16.msra.mxu1 %v1474_v43 }
  0x56   : > { %528 = vmatmul.mubr.bf16.gmra.mrb[4].mxu0 %v1450_v30 }
  0x57   : > { %537 = vmatprep.mubr.bf16.mxu0 %v1594_v1 }
  0x5e   : > { %538 = vmatmul.mubr.bf16.gmra.mrb[8].mxu0 %v1451_v31 }
  0x5f   : > { %547 = vmatprep.mubr.bf16.mxu0 %v1594_v1 }
  0x66   : > { %548 = vmatmul.mubr.bf16.gmra.mrb[12].mxu0 %v1452_v32 }
  0x67   : > { %557 = vmatprep.mubr.bf16.mxu0 %v1594_v1 }
  0x6e   : > { %558 = vmatmul.mubr.bf16.gmra.mrb[16].mxu0 %v1453_v33 }
  0x6f   : > { %567 = vmatprep.mubr.bf16.mxu0 %v1594_v1 }
  0x76   : > { %568 = vmatmul.mubr.bf16.gmra.mrb[20].mxu0 %v1454_v34 }
  0x77   : > { %577 = vmatprep.mubr.bf16.mxu0 %v1594_v1 }
  0x7e   : > { %578 = vmatmul.mubr.bf16.gmra.mrb[24].mxu0 %v1455_v35 }
  0x7f   : > { %587 = vmatprep.mubr.bf16.mxu0 %v1594_v1 }
  0x86   : > { %588 = vmatmul.mubr.bf16.gmra.mrb[28].mxu0 %v1456_v36 }
  0x87   : > { %597 = vmatprep.mubr.bf16.mxu0 %v1594_v1 }
  0x8e   : > { %598 = vmatmul.mubr.bf16.gmra.mrb[32].mxu0 %v1457_v37 }
  0x8f   : > { %607 = vmatprep.mubr.bf16.mxu0 %v1594_v1 }
  0x96   : > { %608 = vmatmul.mubr.bf16.gmra.mrb[36].mxu0 %v1458_v38 }
 0x121   : > { %v519_v51 = vpop.f32.mrb[0].mxu0 }
 0x122   : > { %v520_v52 = vadd.f32 %v519_v51, %v1767_v49  ;;  %v521_v53 = vpop.f32.mrb[1].mxu0 }
 0x123   : > { %v522_v54 = vadd.f32 %v521_v53, %v1769_v50  ;;  %v523_v55 = vpop.f32.mrb[2].mxu0 }
 0x124   : > { %v524_v56 = vadd.f32 %v523_v55, %v1767_v49  ;;  %v525_v57 = vpop.f32.mrb[3].mxu0  ;;  %v616_v59 = vmax.f32 %v520_v52, 0.0 }
 0x125   : > { %v526_v58 = vadd.f32 %v525_v57, %v1769_v50  ;;  %v617_v61 = vmax.f32 %v522_v54, 0.0 }
 0x126   : > { %v618_v60 = vmax.f32 %v524_v56, 0.0 }
 0x127   : > { %v619_v62 = vmax.f32 %v526_v58, 0.0 }
 0x128   : > { %v654_v63 = vpack.c.bf16 %v618_v60, %v616_v59 }
 0x129   : > { %v529_v0 = vpop.f32.mrb[4].mxu0  ;;  %v655_v1 = vpack.c.bf16 %v619_v62, %v617_v61 }
 0x12a   : > { %v530_v2 = vadd.f32 %v529_v0, %v1767_v49  ;;  %v531_v3 = vpop.f32.mrb[5].mxu0 }
 0x12b   : > { %v532_v4 = vadd.f32 %v531_v3, %v1769_v50  ;;  %v533_v5 = vpop.f32.mrb[6].mxu0  ;;  %841 = vmatprep.mubr.bf16.mxu1 %v655_v1 }
 0x12c   : > { %v534_v6 = vadd.f32 %v533_v5, %v1767_v49  ;;  %v535_v7 = vpop.f32.mrb[7].mxu0  ;;  %842 = vmatmul.mubr.bf16.vlgmr.msra.gmra.mrb[0].mxu1 %v654_v63  ;;  %v620_v9 = vmax.f32 %v530_v2, 0.0 }
 0x12d   : > { %v536_v8 = vadd.f32 %v535_v7, %v1769_v50  ;;  %v621_v11 = vmax.f32 %v532_v4, 0.0 }
 0x12e   : > { %v622_v10 = vmax.f32 %v534_v6, 0.0 }
 0x12f   : > { %v623_v12 = vmax.f32 %v536_v8, 0.0 }
 0x130   : > { %v656_v13 = vpack.c.bf16 %v622_v10, %v620_v9 }
 0x131   : > { %v657_v14 = vpack.c.bf16 %v623_v12, %v621_v11  ;;  %v539_v15 = vpop.f32.mrb[8].mxu0 }
 0x132   : > { %v540_v16 = vadd.f32 %v539_v15, %v1767_v49  ;;  %v541_v17 = vpop.f32.mrb[9].mxu0 }
 0x133   : > { %v542_v18 = vadd.f32 %v541_v17, %v1769_v50  ;;  %v543_v19 = vpop.f32.mrb[10].mxu0  ;;  %849 = vmatprep.mubr.bf16.mxu1 %v657_v14 }
 0x134   : > { %v544_v20 = vadd.f32 %v543_v19, %v1767_v49  ;;  %v545_v21 = vpop.f32.mrb[11].mxu0  ;;  %850 = vmatmul.mubr.bf16.gmra.mrb[4].mxu1 %v656_v13  ;;  %v624_v23 = vmax.f32 %v540_v16, 0.0 }
 0x135   : > { %v546_v22 = vadd.f32 %v545_v21, %v1769_v50  ;;  %v625_v25 = vmax.f32 %v542_v18, 0.0 }
 0x136   : > { %v626_v24 = vmax.f32 %v544_v20, 0.0 }
 0x137   : > { %v627_v26 = vmax.f32 %v546_v22, 0.0 }
 0x138   : > { %v658_v27 = vpack.c.bf16 %v626_v24, %v624_v23 }
 0x139   : > { %v659_v28 = vpack.c.bf16 %v627_v26, %v625_v25  ;;  %v549_v29 = vpop.f32.mrb[12].mxu0 }
 0x13a   : > { %v550_v30 = vadd.f32 %v549_v29, %v1767_v49  ;;  %v551_v31 = vpop.f32.mrb[13].mxu0 }
 0x13b   : > { %v552_v32 = vadd.f32 %v551_v31, %v1769_v50  ;;  %v553_v33 = vpop.f32.mrb[14].mxu0  ;;  %857 = vmatprep.mubr.bf16.mxu1 %v659_v28 }
 0x13c   : > { %v554_v34 = vadd.f32 %v553_v33, %v1767_v49  ;;  %v555_v35 = vpop.f32.mrb[15].mxu0  ;;  %858 = vmatmul.mubr.bf16.gmra.mrb[8].mxu1 %v658_v27  ;;  %v628_v37 = vmax.f32 %v550_v30, 0.0 }
 0x13d   : > { %v556_v36 = vadd.f32 %v555_v35, %v1769_v50  ;;  %v629_v39 = vmax.f32 %v552_v32, 0.0 }
 0x13e   : > { %v630_v38 = vmax.f32 %v554_v34, 0.0 }
 0x13f   : > { %v631_v40 = vmax.f32 %v556_v36, 0.0 }
 0x140   : > { %v660_v41 = vpack.c.bf16 %v630_v38, %v628_v37 }
 0x141   : > { %v661_v42 = vpack.c.bf16 %v631_v40, %v629_v39  ;;  %v559_v43 = vpop.f32.mrb[16].mxu0 }
 0x142   : > { %v560_v44 = vadd.f32 %v559_v43, %v1767_v49  ;;  %v561_v45 = vpop.f32.mrb[17].mxu0 }
 0x143   : > { %v562_v46 = vadd.f32 %v561_v45, %v1769_v50  ;;  %v563_v47 = vpop.f32.mrb[18].mxu0  ;;  %865 = vmatprep.mubr.bf16.mxu1 %v661_v42 }
 0x144   : > { %v564_v48 = vadd.f32 %v563_v47, %v1767_v49  ;;  %v565_v51 = vpop.f32.mrb[19].mxu0  ;;  %866 = vmatmul.mubr.bf16.gmra.mrb[12].mxu1 %v660_v41  ;;  %v632_v53 = vmax.f32 %v560_v44, 0.0 }
 0x145   : > { %v566_v52 = vadd.f32 %v565_v51, %v1769_v50  ;;  %v633_v55 = vmax.f32 %v562_v46, 0.0 }
 0x146   : > { %v634_v54 = vmax.f32 %v564_v48, 0.0 }
 0x147   : > { %v635_v56 = vmax.f32 %v566_v52, 0.0 }
 0x148   : > { %v662_v57 = vpack.c.bf16 %v634_v54, %v632_v53 }
 0x149   : > { %v663_v58 = vpack.c.bf16 %v635_v56, %v633_v55  ;;  %v569_v59 = vpop.f32.mrb[20].mxu0 }
 0x14a   : > { %v570_v60 = vadd.f32 %v569_v59, %v1767_v49  ;;  %v571_v61 = vpop.f32.mrb[21].mxu0 }
 0x14b   : > { %v572_v62 = vadd.f32 %v571_v61, %v1769_v50  ;;  %v573_v63 = vpop.f32.mrb[22].mxu0  ;;  %873 = vmatprep.mubr.bf16.mxu1 %v663_v58 }
 0x14c   : > { %v574_v0 = vadd.f32 %v573_v63, %v1767_v49  ;;  %v575_v1 = vpop.f32.mrb[23].mxu0  ;;  %874 = vmatmul.mubr.bf16.gmra.mrb[16].mxu1 %v662_v57  ;;  %v636_v3 = vmax.f32 %v570_v60, 0.0 }
 0x14d   : > { %v576_v2 = vadd.f32 %v575_v1, %v1769_v50  ;;  %v637_v5 = vmax.f32 %v572_v62, 0.0 }
 0x14e   : > { %v638_v4 = vmax.f32 %v574_v0, 0.0  ;;  %v1812_v0 = vld [vmem:[%s1948_s4] ss:$0 sm:$0xff] }
 0x14f   : > { %v639_v6 = vmax.f32 %v576_v2, 0.0 }
 0x150   : > { %v664_v7 = vpack.c.bf16 %v638_v4, %v636_v3 }
 0x151   : > { %v665_v8 = vpack.c.bf16 %v639_v6, %v637_v5  ;;  %v579_v9 = vpop.f32.mrb[24].mxu0  ;;  %v1818_v5 = vld [vmem:[%s1949_s5] ss:$0 sm:$0xff] }
 0x152   : > { %v580_v10 = vadd.f32 %v579_v9, %v1767_v49  ;;  %v581_v11 = vpop.f32.mrb[25].mxu0 }
 0x153   : > { %v582_v12 = vadd.f32 %v581_v11, %v1769_v50  ;;  %v583_v13 = vpop.f32.mrb[26].mxu0  ;;  %881 = vmatprep.mubr.bf16.mxu1 %v665_v8 }
 0x154   : > { %v584_v14 = vadd.f32 %v583_v13, %v1767_v49  ;;  %v585_v15 = vpop.f32.mrb[27].mxu0  ;;  %882 = vmatmul.mubr.bf16.gmra.mrb[20].mxu1 %v664_v7  ;;  %v640_v17 = vmax.f32 %v580_v10, 0.0 }
 0x155   : > { %v586_v16 = vadd.f32 %v585_v15, %v1769_v50  ;;  %v641_v19 = vmax.f32 %v582_v12, 0.0 }
 0x156   : > { %v642_v18 = vmax.f32 %v584_v14, 0.0 }
 0x157   : > { %v643_v20 = vmax.f32 %v586_v16, 0.0 }
 0x158   : > { %v666_v21 = vpack.c.bf16 %v642_v18, %v640_v17 }
 0x159   : > { %v667_v22 = vpack.c.bf16 %v643_v20, %v641_v19  ;;  %v589_v23 = vpop.f32.mrb[28].mxu0 }
 0x15a   : > { %v590_v24 = vadd.f32 %v589_v23, %v1767_v49  ;;  %v591_v25 = vpop.f32.mrb[29].mxu0 }
 0x15b   : > { %v592_v26 = vadd.f32 %v591_v25, %v1769_v50  ;;  %v593_v27 = vpop.f32.mrb[30].mxu0  ;;  %889 = vmatprep.mubr.bf16.mxu1 %v667_v22 }
 0x15c   : > { %v594_v28 = vadd.f32 %v593_v27, %v1767_v49  ;;  %v595_v29 = vpop.f32.mrb[31].mxu0  ;;  %890 = vmatmul.mubr.bf16.gmra.mrb[24].mxu1 %v666_v21  ;;  %v644_v31 = vmax.f32 %v590_v24, 0.0 }
 0x15d   : > { %v596_v30 = vadd.f32 %v595_v29, %v1769_v50  ;;  %v645_v33 = vmax.f32 %v592_v26, 0.0 }
 0x15e   : > { %v646_v32 = vmax.f32 %v594_v28, 0.0 }
 0x15f   : > { %v647_v34 = vmax.f32 %v596_v30, 0.0 }
 0x160   : > { %v668_v35 = vpack.c.bf16 %v646_v32, %v644_v31 }
 0x161   : > { %v669_v36 = vpack.c.bf16 %v647_v34, %v645_v33  ;;  %v599_v37 = vpop.f32.mrb[32].mxu0 }
 0x162   : > { %v600_v38 = vadd.f32 %v599_v37, %v1767_v49  ;;  %v601_v39 = vpop.f32.mrb[33].mxu0 }
 0x163   : > { %v602_v40 = vadd.f32 %v601_v39, %v1769_v50  ;;  %v603_v41 = vpop.f32.mrb[34].mxu0  ;;  %897 = vmatprep.mubr.bf16.mxu1 %v669_v36 }
 0x164   : > { %v604_v42 = vadd.f32 %v603_v41, %v1767_v49  ;;  %v605_v43 = vpop.f32.mrb[35].mxu0  ;;  %898 = vmatmul.mubr.bf16.gmra.mrb[28].mxu1 %v668_v35  ;;  %v648_v45 = vmax.f32 %v600_v38, 0.0 }
 0x165   : > { %v606_v44 = vadd.f32 %v605_v43, %v1769_v50  ;;  %v649_v47 = vmax.f32 %v602_v40, 0.0 }
 0x166   : > { %v650_v46 = vmax.f32 %v604_v42, 0.0 }
 0x167   : > { %v651_v48 = vmax.f32 %v606_v44, 0.0 }
 0x168   : > { %v670_v51 = vpack.c.bf16 %v650_v46, %v648_v45 }
 0x169   : > { %v671_v52 = vpack.c.bf16 %v651_v48, %v649_v47  ;;  %v609_v53 = vpop.f32.mrb[36].mxu0 }
 0x16a   : > { %v610_v54 = vadd.f32 %v609_v53, %v1767_v49  ;;  %v611_v55 = vpop.f32.mrb[37].mxu0 }
 0x16b   : > { %v612_v56 = vadd.f32 %v611_v55, %v1769_v50  ;;  %v613_v57 = vpop.f32.mrb[38].mxu0  ;;  %905 = vmatprep.mubr.bf16.mxu1 %v671_v52 }
 0x16c   : > { %v614_v58 = vpop.f32.mrb[39].mxu0  ;;  %906 = vmatmul.mubr.bf16.gmra.mrb[32].mxu1 %v670_v51  ;;  %v652_v60 = vmax.f32 %v610_v54, 0.0 }
 0x16d   : > { %v653_v59 = vmax.f32 %v612_v56, 0.0 }
 0x16e   : > { %v672_v62 = vpack.c.bf16 %v652_v60, %v652_v60 }
 0x16f   : > { %v673_v61 = vpack.c.bf16 %v653_v59, %v653_v59 }
 0x171   : > { %913 = vmatprep.mubr.bf16.mxu1 %v673_v61 }
 0x174   : > { %914 = vmatmul.mubr.bf16.gmra.mrb[36].mxu1 %v672_v62 }
 0x1ff   : > { %v1343_v63 = vpop.f32.mrb[0].mxu1 }
 0x200   : > { %v1344_v49 = vpop.f32.mrb[1].mxu1 }
 0x201   : > { %v1345_v1 = vadd.f32 %v1344_v49, %v1343_v63  ;;  %v1346_v2 = vpop.f32.mrb[2].mxu1 }
 0x202   : > { %v1347_v50 = vpop.f32.mrb[3].mxu1 }
 0x203   : > { %v844_v3 = vadd.f32 %v1345_v1, %v1812_v0  ;;  %v1348_v4 = vadd.f32 %v1347_v50, %v1346_v2 }
 0x205   : > { %v921_v6 = vmax.f32 %v844_v3, 0.0  ;;  %v847_v7 = vadd.f32 %v1348_v4, %v1812_v0 }
 0x207   : > { %v922_v8 = vmax.f32 %v847_v7, 0.0  ;;  %v1349_v9 = vpop.f32.mrb[4].mxu1  ;;  %v947_v10 = vmul.f32 %v1818_v5, %v921_v6 }
 0x208   : > { %v1350_v11 = vpop.f32.mrb[5].mxu1 }
 0x209   : > { %v1351_v12 = vadd.f32 %v1350_v11, %v1349_v9  ;;  %v1352_v13 = vpop.f32.mrb[6].mxu1  ;;  %v967_v14 = vsel %vm966_vm0, %v947_v10, 0.0  ;;  %v948_v15 = vmul.f32 %v1818_v5, %v922_v8 }
 0x20a   : > { %v1353_v16 = vpop.f32.mrb[7].mxu1  ;;  %968 = vadd.xlane.f32.xlu0 %v967_v14 }
 0x20b   : > { %v852_v17 = vadd.f32 %v1351_v12, %v1812_v0  ;;  %v1354_v18 = vadd.f32 %v1353_v16, %v1352_v13  ;;  %v970_v21 = vsel %vm966_vm0, %v948_v15, 0.0 }
 0x20d   : > { %v923_v19 = vmax.f32 %v852_v17, 0.0  ;;  %v855_v20 = vadd.f32 %v1354_v18, %v1812_v0 }
 0x20e   : > { %971 = vadd.xlane.f32.xlu0 %v970_v21 }
 0x20f   : > { %v924_v22 = vmax.f32 %v855_v20, 0.0  ;;  %v1355_v23 = vpop.f32.mrb[8].mxu1  ;;  %v949_v24 = vmul.f32 %v1818_v5, %v923_v19 }
 0x210   : > { %v1356_v25 = vpop.f32.mrb[9].mxu1 }
 0x211   : > { %v1357_v26 = vadd.f32 %v1356_v25, %v1355_v23  ;;  %v1358_v27 = vpop.f32.mrb[10].mxu1  ;;  %v973_v28 = vsel %vm966_vm0, %v949_v24, 0.0  ;;  %v950_v29 = vmul.f32 %v1818_v5, %v924_v22 }
 0x212   : > { %v1359_v30 = vpop.f32.mrb[11].mxu1  ;;  %974 = vadd.xlane.f32.xlu1 %v973_v28 }
 0x213   : > { %v860_v31 = vadd.f32 %v1357_v26, %v1812_v0  ;;  %v1360_v32 = vadd.f32 %v1359_v30, %v1358_v27  ;;  %v976_v35 = vsel %vm966_vm0, %v950_v29, 0.0 }
 0x215   : > { %v925_v33 = vmax.f32 %v860_v31, 0.0  ;;  %v863_v34 = vadd.f32 %v1360_v32, %v1812_v0 }
 0x216   : > { %977 = vadd.xlane.f32.xlu1 %v976_v35 }
 0x217   : > { %v926_v36 = vmax.f32 %v863_v34, 0.0  ;;  %v1361_v37 = vpop.f32.mrb[12].mxu1  ;;  %v951_v38 = vmul.f32 %v1818_v5, %v925_v33 }
 0x218   : > { %v1362_v39 = vpop.f32.mrb[13].mxu1 }
 0x219   : > { %v1363_v40 = vadd.f32 %v1362_v39, %v1361_v37  ;;  %v1364_v41 = vpop.f32.mrb[14].mxu1  ;;  %v979_v42 = vsel %vm966_vm0, %v951_v38, 0.0  ;;  %v952_v43 = vmul.f32 %v1818_v5, %v926_v36 }
 0x21a   : > { %v1365_v44 = vpop.f32.mrb[15].mxu1  ;;  %980 = vadd.xlane.f32.xlu0 %v979_v42 }
 0x21b   : > { %v868_v45 = vadd.f32 %v1363_v40, %v1812_v0  ;;  %v1366_v46 = vadd.f32 %v1365_v44, %v1364_v41  ;;  %v982_v47 = vsel %vm966_vm0, %v952_v43, 0.0 }
 0x21c   : > { %983 = vadd.xlane.f32.xlu1 %v982_v47 }
 0x21d   : > { %v927_v48 = vmax.f32 %v868_v45, 0.0  ;;  %v871_v51 = vadd.f32 %v1366_v46, %v1812_v0 }
 0x21f   : > { %v928_v52 = vmax.f32 %v871_v51, 0.0  ;;  %v1367_v53 = vpop.f32.mrb[16].mxu1  ;;  %v953_v54 = vmul.f32 %v1818_v5, %v927_v48 }
 0x220   : > { %v1368_v55 = vpop.f32.mrb[17].mxu1 }
 0x221   : > { %v1369_v56 = vadd.f32 %v1368_v55, %v1367_v53  ;;  %v1370_v57 = vpop.f32.mrb[18].mxu1  ;;  %v985_v58 = vsel %vm966_vm0, %v953_v54, 0.0  ;;  %v954_v59 = vmul.f32 %v1818_v5, %v928_v52 }
 0x222   : > { %v1371_v60 = vpop.f32.mrb[19].mxu1  ;;  %986 = vadd.xlane.f32.xlu0 %v985_v58 }
 0x223   : > { %v876_v61 = vadd.f32 %v1369_v56, %v1812_v0  ;;  %v1372_v62 = vadd.f32 %v1371_v60, %v1370_v57  ;;  %v988_v63 = vsel %vm966_vm0, %v954_v59, 0.0 }
 0x224   : > { %989 = vadd.xlane.f32.xlu1 %v988_v63 }
 0x225   : > { %v929_v49 = vmax.f32 %v876_v61, 0.0  ;;  %v879_v1 = vadd.f32 %v1372_v62, %v1812_v0 }
 0x227   : > { %v930_v2 = vmax.f32 %v879_v1, 0.0  ;;  %v1373_v50 = vpop.f32.mrb[20].mxu1  ;;  %v955_v3 = vmul.f32 %v1818_v5, %v929_v49 }
 0x228   : > { %v1374_v4 = vpop.f32.mrb[21].mxu1 }
 0x229   : > { %v1375_v6 = vadd.f32 %v1374_v4, %v1373_v50  ;;  %v1376_v7 = vpop.f32.mrb[22].mxu1  ;;  %v991_v8 = vsel %vm966_vm0, %v955_v3, 0.0  ;;  %v956_v9 = vmul.f32 %v1818_v5, %v930_v2 }
 0x22a   : > { %v1377_v10 = vpop.f32.mrb[23].mxu1  ;;  %992 = vadd.xlane.f32.xlu0 %v991_v8 }
 0x22b   : > { %v884_v11 = vadd.f32 %v1375_v6, %v1812_v0  ;;  %v1378_v12 = vadd.f32 %v1377_v10, %v1376_v7  ;;  %v994_v13 = vsel %vm966_vm0, %v956_v9, 0.0  ;;  %v1876_v10 = vld [vmem:[#allocation2] ss:$0 sm:$0xff] }
 0x22c   : > { %995 = vadd.xlane.f32.xlu1 %v994_v13 }
 0x22d   : > { %v931_v14 = vmax.f32 %v884_v11, 0.0  ;;  %v887_v15 = vadd.f32 %v1378_v12, %v1812_v0 }
 0x22f   : > { %v932_v16 = vmax.f32 %v887_v15, 0.0  ;;  %v1379_v17 = vpop.f32.mrb[24].mxu1  ;;  %v957_v18 = vmul.f32 %v1818_v5, %v931_v14 }
 0x230   : > { %v1380_v19 = vpop.f32.mrb[25].mxu1 }
 0x231   : > { %v1381_v20 = vadd.f32 %v1380_v19, %v1379_v17  ;;  %v1382_v21 = vpop.f32.mrb[26].mxu1  ;;  %v997_v22 = vsel %vm966_vm0, %v957_v18, 0.0  ;;  %v958_v23 = vmul.f32 %v1818_v5, %v932_v16 }
 0x232   : > { %v1383_v24 = vpop.f32.mrb[27].mxu1  ;;  %998 = vadd.xlane.f32.xlu0 %v997_v22 }
 0x233   : > { %v892_v25 = vadd.f32 %v1381_v20, %v1812_v0  ;;  %v1384_v26 = vadd.f32 %v1383_v24, %v1382_v21  ;;  %v1000_v27 = vsel %vm966_vm0, %v958_v23, 0.0 }
 0x234   : > { %1001 = vadd.xlane.f32.xlu1 %v1000_v27 }
 0x235   : > { %v933_v28 = vmax.f32 %v892_v25, 0.0  ;;  %v895_v29 = vadd.f32 %v1384_v26, %v1812_v0 }
 0x237   : > { %v934_v30 = vmax.f32 %v895_v29, 0.0  ;;  %v1385_v31 = vpop.f32.mrb[28].mxu1  ;;  %v959_v32 = vmul.f32 %v1818_v5, %v933_v28 }
 0x238   : > { %v1386_v33 = vpop.f32.mrb[29].mxu1 }
 0x239   : > { %v1387_v34 = vadd.f32 %v1386_v33, %v1385_v31  ;;  %v1388_v35 = vpop.f32.mrb[30].mxu1  ;;  %v1003_v36 = vsel %vm966_vm0, %v959_v32, 0.0  ;;  %v960_v37 = vmul.f32 %v1818_v5, %v934_v30 }
 0x23a   : > { %v1389_v38 = vpop.f32.mrb[31].mxu1  ;;  %1004 = vadd.xlane.f32.xlu0 %v1003_v36 }
 0x23b   : > { %v900_v39 = vadd.f32 %v1387_v34, %v1812_v0  ;;  %v1390_v40 = vadd.f32 %v1389_v38, %v1388_v35  ;;  %v1006_v41 = vsel %vm966_vm0, %v960_v37, 0.0 }
 0x23c   : > { %1007 = vadd.xlane.f32.xlu1 %v1006_v41 }
 0x23d   : > { %v935_v42 = vmax.f32 %v900_v39, 0.0  ;;  %v903_v43 = vadd.f32 %v1390_v40, %v1812_v0 }
 0x23f   : > { %v936_v44 = vmax.f32 %v903_v43, 0.0  ;;  %v1391_v45 = vpop.f32.mrb[32].mxu1  ;;  %v961_v46 = vmul.f32 %v1818_v5, %v935_v42 }
 0x240   : > { %v1392_v47 = vpop.f32.mrb[33].mxu1 }
 0x241   : > { %v1393_v48 = vadd.f32 %v1392_v47, %v1391_v45  ;;  %v1394_v51 = vpop.f32.mrb[34].mxu1  ;;  %v1009_v52 = vsel %vm966_vm0, %v961_v46, 0.0  ;;  %v962_v53 = vmul.f32 %v1818_v5, %v936_v44 }
 0x242   : > { %v1395_v54 = vpop.f32.mrb[35].mxu1  ;;  %1010 = vadd.xlane.f32.xlu0 %v1009_v52 }
 0x243   : > { %v908_v55 = vadd.f32 %v1393_v48, %v1812_v0  ;;  %v1396_v56 = vadd.f32 %v1395_v54, %v1394_v51  ;;  %v1012_v57 = vsel %vm966_vm0, %v962_v53, 0.0 }
 0x244   : > { %1013 = vadd.xlane.f32.xlu1 %v1012_v57 }
 0x245   : > { %v937_v58 = vmax.f32 %v908_v55, 0.0  ;;  %v911_v59 = vadd.f32 %v1396_v56, %v1812_v0 }
 0x247   : > { %v938_v60 = vmax.f32 %v911_v59, 0.0  ;;  %v1397_v61 = vpop.f32.mrb[36].mxu1  ;;  %v963_v62 = vmul.f32 %v1818_v5, %v937_v58 }
 0x248   : > { %v1398_v63 = vpop.f32.mrb[37].mxu1 }
 0x249   : > { %v1399_v49 = vadd.f32 %v1398_v63, %v1397_v61  ;;  %v1400_v1 = vpop.f32.mrb[38].mxu1  ;;  %v1015_v2 = vsel %vm966_vm0, %v963_v62, 0.0  ;;  %v964_v50 = vmul.f32 %v1818_v5, %v938_v60 }
 0x24a   : > { %v1401_v3 = vpop.f32.mrb[39].mxu1  ;;  %1016 = vadd.xlane.f32.xlu0 %v1015_v2 }
 0x24b   : > { %v916_v4 = vadd.f32 %v1399_v49, %v1812_v0  ;;  %v1018_v6 = vsel %vm966_vm0, %v964_v50, 0.0 }
 0x24c   : > { %1019 = vadd.xlane.f32.xlu1 %v1018_v6 }
 0x24d   : > { %v939_v7 = vmax.f32 %v916_v4, 0.0 }
 0x24f   : > { %v965_v8 = vmul.f32 %v1818_v5, %v939_v7 }
 0x251   : > { %v1021_v9 = vsel %vm966_vm0, %v965_v8, 0.0 }
 0x252   : > { %1022 = vadd.xlane.f32.xlu0 %v1021_v9 }
 0x297   : > { %v969_v11 = vpop.xlane.xlu0 %968 }
 0x298   : > { %v1031_v12 = vadd.f32 %v1876_v10, %v969_v11 }
 0x29a   : > { %v1306_v13 = vmul.f32 -1.442695, %v1031_v12 }
 0x29b   : > { %v972_v14 = vpop.xlane.xlu0 %971 }
 0x29c   : > { %1475 = vpow2.f32 %v1306_v13  ;;  %v1032_v15 = vadd.f32 %v1876_v10, %v972_v14 }
 0x29e   : > { %v1307_v0 = vmul.f32 -1.442695, %v1032_v15 }
 0x29f   : > { %v975_v16 = vpop.xlane.xlu1 %974 }
 0x2a0   : > { %1477 = vpow2.f32 %v1307_v0  ;;  %v1033_v17 = vadd.f32 %v1876_v10, %v975_v16 }
 0x2a2   : > { %v1308_v18 = vmul.f32 -1.442695, %v1033_v17 }
 0x2a3   : > { %v978_v5 = vpop.xlane.xlu1 %977 }
 0x2a4   : > { %1479 = vpow2.f32 %v1308_v18  ;;  %v1034_v19 = vadd.f32 %v1876_v10, %v978_v5 }
 0x2a6   : > { %v1476_v20 = vpop.eup %1475  ;;  %v1309_v21 = vmul.f32 -1.442695, %v1034_v19 }
 0x2a7   : > { %v1107_v22 = vadd.f32 1.0, %v1476_v20  ;;  %v981_v23 = vpop.xlane.xlu0 %980 }
 0x2a8   : > { %1481 = vpow2.f32 %v1309_v21  ;;  %v1035_v24 = vadd.f32 %v1876_v10, %v981_v23 }
 0x2a9   : > { %1483 = vrcp.f32 %v1107_v22  ;;  %v984_v25 = vpop.xlane.xlu1 %983 }
 0x2aa   : > { %v1478_v26 = vpop.eup %1477  ;;  %v1310_v27 = vmul.f32 -1.442695, %v1035_v24  ;;  %v1036_v28 = vadd.f32 %v1876_v10, %v984_v25 }
 0x2ab   : > { %v1108_v29 = vadd.f32 1.0, %v1478_v26 }
 0x2ac   : > { %1485 = vpow2.f32 %v1310_v27  ;;  %v1311_v30 = vmul.f32 -1.442695, %v1036_v28 }
 0x2ad   : > { %1487 = vrcp.f32 %v1108_v29 }
 0x2ae   : > { %v1480_v31 = vpop.eup %1479  ;;  %1489 = vpow2.f32 %v1311_v30 }
 0x2af   : > { %v1109_v32 = vadd.f32 1.0, %v1480_v31  ;;  %v987_v33 = vpop.xlane.xlu0 %986 }
 0x2b0   : > { %v1037_v34 = vadd.f32 %v1876_v10, %v987_v33 }
 0x2b1   : > { %1491 = vrcp.f32 %v1109_v32  ;;  %v990_v35 = vpop.xlane.xlu1 %989 }
 0x2b2   : > { %v1482_v36 = vpop.eup %1481  ;;  %v1312_v37 = vmul.f32 -1.442695, %v1037_v34  ;;  %v1038_v38 = vadd.f32 %v1876_v10, %v990_v35 }
 0x2b3   : > { %v1484_v39 = vpop.eup %1483  ;;  %v1110_v40 = vadd.f32 1.0, %v1482_v36 }
 0x2b4   : > { %1165 = vst.msk [vmem:[%s1889_s23] sm:$0xff] %vm1164_vm1, %v1484_v39  ;;  %1493 = vpow2.f32 %v1312_v37  ;;  %v1313_v41 = vmul.f32 -1.442695, %v1038_v38 }
 0x2b5   : > { %1495 = vrcp.f32 %v1110_v40 }
 0x2b6   : > { %v1486_v42 = vpop.eup %1485  ;;  %1497 = vpow2.f32 %v1313_v41 }
 0x2b7   : > { %v1488_v43 = vpop.eup %1487  ;;  %v1111_v44 = vadd.f32 1.0, %v1486_v42  ;;  %v993_v45 = vpop.xlane.xlu0 %992 }
 0x2b8   : > { %v1490_v46 = vpop.eup %1489  ;;  %1166 = vst.msk [vmem:[%s1889_s23 + $0x8] sm:$0xff] %vm1164_vm1, %v1488_v43  ;;  %v1039_v47 = vadd.f32 %v1876_v10, %v993_v45 }
 0x2b9   : > { %1499 = vrcp.f32 %v1111_v44  ;;  %v1112_v48 = vadd.f32 1.0, %v1490_v46  ;;  %v996_v51 = vpop.xlane.xlu1 %995 }
 0x2ba   : > { %v1314_v52 = vmul.f32 -1.442695, %v1039_v47  ;;  %v1040_v53 = vadd.f32 %v1876_v10, %v996_v51 }
 0x2bb   : > { %v1492_v54 = vpop.eup %1491  ;;  %1501 = vrcp.f32 %v1112_v48 }
 0x2bc   : > { %1167 = vst.msk [vmem:[%s1889_s23 + $0x10] sm:$0xff] %vm1164_vm1, %v1492_v54  ;;  %1503 = vpow2.f32 %v1314_v52  ;;  %v1315_v55 = vmul.f32 -1.442695, %v1040_v53 }
 0x2be   : > { %v1494_v56 = vpop.eup %1493  ;;  %1505 = vpow2.f32 %v1315_v55 }
 0x2bf   : > { %v1496_v57 = vpop.eup %1495  ;;  %v1113_v58 = vadd.f32 1.0, %v1494_v56  ;;  %v999_v59 = vpop.xlane.xlu0 %998 }
 0x2c0   : > { %v1498_v60 = vpop.eup %1497  ;;  %1168 = vst.msk [vmem:[%s1889_s23 + $0x18] sm:$0xff] %vm1164_vm1, %v1496_v57  ;;  %v1041_v61 = vadd.f32 %v1876_v10, %v999_v59 }
 0x2c1   : > { %1507 = vrcp.f32 %v1113_v58  ;;  %v1114_v62 = vadd.f32 1.0, %v1498_v60  ;;  %v1002_v63 = vpop.xlane.xlu1 %1001 }
 0x2c2   : > { %v1316_v49 = vmul.f32 -1.442695, %v1041_v61  ;;  %v1042_v1 = vadd.f32 %v1876_v10, %v1002_v63 }
 0x2c3   : > { %v1500_v2 = vpop.eup %1499  ;;  %1509 = vrcp.f32 %v1114_v62 }
 0x2c4   : > { %1169 = vst.msk [vmem:[%s1889_s23 + $0x20] sm:$0xff] %vm1164_vm1, %v1500_v2  ;;  %1511 = vpow2.f32 %v1316_v49  ;;  %v1317_v50 = vmul.f32 -1.442695, %v1042_v1 }
 0x2c5   : > { %v1502_v3 = vpop.eup %1501 }
 0x2c6   : > { %v1504_v4 = vpop.eup %1503  ;;  %1170 = vst.msk [vmem:[%s1889_s23 + $0x28] sm:$0xff] %vm1164_vm1, %v1502_v3  ;;  %1513 = vpow2.f32 %v1317_v50 }
 0x2c7   : > { %v1115_v6 = vadd.f32 1.0, %v1504_v4  ;;  %v1005_v7 = vpop.xlane.xlu0 %1004 }
 0x2c8   : > { %v1506_v8 = vpop.eup %1505  ;;  %v1043_v9 = vadd.f32 %v1876_v10, %v1005_v7 }
 0x2c9   : > { %1515 = vrcp.f32 %v1115_v6  ;;  %v1116_v11 = vadd.f32 1.0, %v1506_v8  ;;  %v1008_v12 = vpop.xlane.xlu1 %1007 }
 0x2ca   : > { %v1318_v13 = vmul.f32 -1.442695, %v1043_v9  ;;  %v1044_v14 = vadd.f32 %v1876_v10, %v1008_v12 }
 0x2cb   : > { %v1508_v15 = vpop.eup %1507  ;;  %1517 = vrcp.f32 %v1116_v11 }
 0x2cc   : > { %1171 = vst.msk [vmem:[%s1889_s23 + $0x30] sm:$0xff] %vm1164_vm1, %v1508_v15  ;;  %1519 = vpow2.f32 %v1318_v13  ;;  %v1319_v0 = vmul.f32 -1.442695, %v1044_v14 }
 0x2cd   : > { %v1510_v16 = vpop.eup %1509 }
 0x2ce   : > { %v1512_v17 = vpop.eup %1511  ;;  %1172 = vst.msk [vmem:[%s1889_s23 + $0x38] sm:$0xff] %vm1164_vm1, %v1510_v16  ;;  %1521 = vpow2.f32 %v1319_v0 }
 0x2cf   : > { %v1117_v18 = vadd.f32 1.0, %v1512_v17  ;;  %v1011_v5 = vpop.xlane.xlu0 %1010 }
 0x2d0   : > { %v1514_v19 = vpop.eup %1513  ;;  %v1045_v20 = vadd.f32 %v1876_v10, %v1011_v5 }
 0x2d1   : > { %1523 = vrcp.f32 %v1117_v18  ;;  %v1118_v21 = vadd.f32 1.0, %v1514_v19  ;;  %v1014_v22 = vpop.xlane.xlu1 %1013 }
 0x2d2   : > { %v1320_v23 = vmul.f32 -1.442695, %v1045_v20  ;;  %v1046_v24 = vadd.f32 %v1876_v10, %v1014_v22 }
 0x2d3   : > { %v1516_v25 = vpop.eup %1515  ;;  %1525 = vrcp.f32 %v1118_v21 }
 0x2d4   : > { %1173 = vst.msk [vmem:[%s1889_s23 + $0x40] sm:$0xff] %vm1164_vm1, %v1516_v25  ;;  %1527 = vpow2.f32 %v1320_v23  ;;  %v1321_v26 = vmul.f32 -1.442695, %v1046_v24 }
 0x2d5   : > { %v1518_v27 = vpop.eup %1517 }
 0x2d6   : > { %v1520_v28 = vpop.eup %1519  ;;  %1174 = vst.msk [vmem:[%s1889_s23 + $0x48] sm:$0xff] %vm1164_vm1, %v1518_v27  ;;  %1529 = vpow2.f32 %v1321_v26 }
 0x2d7   : > { %v1119_v29 = vadd.f32 1.0, %v1520_v28  ;;  %v1017_v30 = vpop.xlane.xlu0 %1016 }
 0x2d8   : > { %v1522_v31 = vpop.eup %1521  ;;  %v1047_v32 = vadd.f32 %v1876_v10, %v1017_v30 }
 0x2d9   : > { %1531 = vrcp.f32 %v1119_v29  ;;  %v1120_v33 = vadd.f32 1.0, %v1522_v31  ;;  %v1020_v34 = vpop.xlane.xlu1 %1019 }
 0x2da   : > { %v1322_v35 = vmul.f32 -1.442695, %v1047_v32  ;;  %v1048_v36 = vadd.f32 %v1876_v10, %v1020_v34 }
 0x2db   : > { %v1524_v37 = vpop.eup %1523  ;;  %1533 = vrcp.f32 %v1120_v33 }
 0x2dc   : > { %1175 = vst.msk [vmem:[%s1889_s23 + $0x50] sm:$0xff] %vm1164_vm1, %v1524_v37  ;;  %1535 = vpow2.f32 %v1322_v35  ;;  %v1323_v38 = vmul.f32 -1.442695, %v1048_v36 }
 0x2dd   : > { %v1526_v39 = vpop.eup %1525 }
 0x2de   : > { %v1528_v40 = vpop.eup %1527  ;;  %1176 = vst.msk [vmem:[%s1889_s23 + $0x58] sm:$0xff] %vm1164_vm1, %v1526_v39  ;;  %1537 = vpow2.f32 %v1323_v38 }
 0x2df   : > { %v1121_v41 = vadd.f32 1.0, %v1528_v40  ;;  %v1023_v42 = vpop.xlane.xlu0 %1022 }
 0x2e0   : > { %v1530_v43 = vpop.eup %1529  ;;  %v1049_v44 = vadd.f32 %v1876_v10, %v1023_v42 }
 0x2e1   : > { %1539 = vrcp.f32 %v1121_v41  ;;  %v1122_v45 = vadd.f32 1.0, %v1530_v43 }
 0x2e2   : > { %v1324_v46 = vmul.f32 -1.442695, %v1049_v44 }
 0x2e3   : > { %v1532_v47 = vpop.eup %1531  ;;  %1541 = vrcp.f32 %v1122_v45 }
 0x2e4   : > { %1177 = vst.msk [vmem:[%s1889_s23 + $0x60] sm:$0xff] %vm1164_vm1, %v1532_v47  ;;  %1543 = vpow2.f32 %v1324_v46 }
 0x2e5   : > { %v1534_v48 = vpop.eup %1533 }
 0x2e6   : > { %v1536_v51 = vpop.eup %1535  ;;  %1178 = vst.msk [vmem:[%s1889_s23 + $0x68] sm:$0xff] %vm1164_vm1, %v1534_v48 }
 0x2e7   : > { %v1123_v52 = vadd.f32 1.0, %v1536_v51 }
 0x2e8   : > { %v1538_v53 = vpop.eup %1537 }
 0x2e9   : > { %1545 = vrcp.f32 %v1123_v52  ;;  %v1124_v10 = vadd.f32 1.0, %v1538_v53 }
 0x2eb   : > { %v1540_v54 = vpop.eup %1539  ;;  %1547 = vrcp.f32 %v1124_v10 }
 0x2ec   : > { %1179 = vst.msk [vmem:[%s1889_s23 + $0x70] sm:$0xff] %vm1164_vm1, %v1540_v54 }
 0x2ed   : > { %v1542_v55 = vpop.eup %1541 }
 0x2ee   : > { %v1544_v56 = vpop.eup %1543  ;;  %1180 = vst.msk [vmem:[%s1889_s23 + $0x78] sm:$0xff] %vm1164_vm1, %v1542_v55 }
 0x2ef   : > { %v1125_v57 = vadd.f32 1.0, %v1544_v56 }
 0x2f1   : > { %1549 = vrcp.f32 %v1125_v57 }
 0x2f3   : > { %v1546_v58 = vpop.eup %1545 }
 0x2f4   : > { %1181 = vst.msk [vmem:[%s1889_s23 + $0x80] sm:$0xff] %vm1164_vm1, %v1546_v58 }
 0x2f5   : > { %v1548_v59 = vpop.eup %1547 }
 0x2f6   : > { %1182 = vst.msk [vmem:[%s1889_s23 + $0x88] sm:$0xff] %vm1164_vm1, %v1548_v59 }
 0x2fb   : > { %v1550_v60 = vpop.eup %1549 }
 0x2fc   : > { %1183 = vst.msk [vmem:[%s1889_s23 + $0x90] sm:$0xff] %vm1164_vm1, %v1550_v60 }
 0x2fd PF: > { %s20_s26 = sadd.s32 1, %s1589_s26  }
 0x2fe   : > { %p17_p3 = scmp.ge.s32.totalorder %s20_s26, 4  }
 0x300   :  { %19 = sbr.rel (!%p17_p3) target bundleno = 4 (0x4), region = 83 }
 0x307   :  { %1206 = vsyncpa [#allocation4], 1 }
 0x308   :  { %1208 = vsyncpa [#allocation4 + $0x1], 1 }

</bundles_post_ra>
